<compile_context>
chip_gen: v6e
topology: v6e:2x2x1
jax: 0.10.0
libtpu: 0.0.40
codegen_flags: <defaults>
</compile_context>

<pallas_src>
import math
import functools

import jax
import jax.numpy as jnp
from jax import lax
from jax.experimental import pallas as pl
from jax.experimental.pallas import tpu as pltpu


def _spatial_fused_kernel(x_ref, xp_ref, wsrc_ref, wtgt_ref, wout_ref,
                          sq_ref, tgt_ref, *, number, k):
    """Per-batch fused forward.

    x_ref   : (1, C, N, P)  f32   -- x_pr.permute(0,2,3,1)
    xp_ref  : (1, Pp, N, P) f32   -- x_p[:, :, :, number] transposed to node-major
    wsrc/wtgt : (P, D) bf16 ; wout : (D, P) bf16
    sq_ref  : (1, N, P) f32
    tgt_ref : (1, N, P) f32       -- tgt in node-major form (transposed in wrapper)
    """
    f32, bf16 = jnp.float32, jnp.bfloat16
    x = x_ref[0]                                            # (C, N, P)
    C, N, P = x.shape
    D = wsrc_ref.shape[1]

    # ---- getA_corr proxy: Pearson correlation over time of the channel-mean series ----
    series = jnp.mean(x, axis=0)                            # (N, P)
    mu = jnp.mean(series, axis=-1, keepdims=True)           # (N, 1)
    xc = series - mu
    ss = jnp.sum(xc * xc, axis=-1, keepdims=True)           # (N, 1)
    xn = xc * lax.rsqrt(ss + 1e-12)                         # EUP rsqrt; f32 VPU math
    xn_bf = xn.astype(bf16)
    A = lax.dot_general(xn_bf, xn_bf, (((1,), (1,)), ((), ())),
                        preferred_element_type=f32)         # (N, N) bf16 MXU, f32 acc

    # ---- tgt = mean over the period axis (node-major) ----
    tgt_np = jnp.mean(xp_ref[0], axis=0)                    # (N, P) f32

    # ---- shared embeddings: gathering neighbour rows commutes with the per-row linear,
    # so embed every node once and select embeddings (no (N,K,N) one-hot tensor). ----
    xs = x[number]                                          # (N, P) channel-`number` series
    emb_all = jnp.dot(xs.astype(bf16), wsrc_ref[...],
                      preferred_element_type=f32)           # (N, D)
    tgt_emb = jnp.dot(tgt_np.astype(bf16), wtgt_ref[...],
                      preferred_element_type=f32)           # (N, D)
    # All pairwise query/key scores in one MXU matmul: G[n, m] = tgt_emb[n] . emb_all[m]
    G = lax.dot_general(tgt_emb.astype(bf16), emb_all.astype(bf16),
                        (((1,), (1,)), ((), ())),
                        preferred_element_type=f32)         # (N, N)

    # ---- in-kernel top-k over A (k static argmax+mask steps); replaces torch.argsort
    # + python gather loops. Tie-break = first (lowest) index, like lax.top_k. ----
    colf = lax.broadcasted_iota(jnp.int32, (N, N), 1).astype(f32)
    scale = jnp.float32(1.0 / math.sqrt(D))
    a_work = A
    hots, score_cols = [], []
    for _ in range(k):
        amax = jnp.max(a_work, axis=-1, keepdims=True)                    # (N, 1)
        first = jnp.min(jnp.where(a_work == amax, colf, float(N)),
                        axis=-1, keepdims=True)                           # (N, 1)
        hot = colf == first                                               # (N, N) per-row one-hot
        hots.append(hot)
        score_cols.append(jnp.sum(jnp.where(hot, G, 0.0), axis=-1,
                                  keepdims=True) * scale)                 # (N, 1)
        a_work = jnp.where(hot, jnp.float32(-1e9), a_work)

    # ---- softmax over the k selected neighbours (f32 VPU/EUP) ----
    m = score_cols[0]
    for kk in range(1, k):
        m = jnp.maximum(m, score_cols[kk])
    es = [jnp.exp(sc - m) for sc in score_cols]
    denom = es[0]
    for kk in range(1, k):
        denom = denom + es[kk]
    inv = pl.reciprocal(denom, approx=True)                               # EUP divide

    # Fold attention weights back onto the node axis, contract on the MXU:
    #   ctx[n] = sum_k p[n,k] * emb_all[topk_k(A[n])]
    w_sel = (es[0] * inv) * hots[0].astype(f32)
    for kk in range(1, k):
        w_sel = w_sel + (es[kk] * inv) * hots[kk].astype(f32)             # (N, N)
    ctx = jnp.dot(w_sel.astype(bf16), emb_all.astype(bf16),
                  preferred_element_type=f32)                             # (N, D)
    out = jnp.dot(ctx.astype(bf16), wout_ref[...],
                  preferred_element_type=f32)                             # (N, P)

    # TODO(synk): at production N (>=128) lay the node axis last for lane-dense
    # (unmasked) stores; at these toy sizes the whole output is < 1 vreg per step.
    sq_ref[0] = out
    tgt_ref[0] = tgt_np


@functools.partial(jax.jit, static_argnames=("number", "k"))
def spatial_forward(x_pr, x_p, number, k, w_src, w_tgt, w_out):
    bs, P, C, N = x_pr.shape
    Pp = x_p.shape[1]
    D = w_src.shape[-1]

    # Node-major views (mirrors the torch permutes); tiny copies XLA fuses into the feed.
    x = jnp.transpose(x_pr, (0, 2, 3, 1)).astype(jnp.float32)                       # (bs, C, N, P)
    xp = jnp.transpose(x_p[:, :, :, number, :], (0, 1, 3, 2)).astype(jnp.float32)   # (bs, Pp, N, P)
    # bf16 MXU operands; accumulation stays f32 inside the kernel.
    wsrc = w_src.astype(jnp.bfloat16)
    wtgt = w_tgt.astype(jnp.bfloat16)
    wout = w_out.astype(jnp.bfloat16)

    kernel = functools.partial(_spatial_fused_kernel, number=number, k=k)
    sq_pr, tgt_np = pl.pallas_call(
        kernel,
        out_shape=(jax.ShapeDtypeStruct((bs, N, P), jnp.float32),
                   jax.ShapeDtypeStruct((bs, N, P), jnp.float32)),
        grid=(bs,),
        in_specs=[
            pl.BlockSpec((1, C, N, P), lambda i: (i, 0, 0, 0)),
            pl.BlockSpec((1, Pp, N, P), lambda i: (i, 0, 0, 0)),
            pl.BlockSpec((P, D), lambda i: (0, 0)),
            pl.BlockSpec((P, D), lambda i: (0, 0)),
            pl.BlockSpec((D, P), lambda i: (0, 0)),
        ],
        out_specs=(pl.BlockSpec((1, N, P), lambda i: (i, 0, 0)),
                   pl.BlockSpec((1, N, P), lambda i: (i, 0, 0))),
        compiler_params=pltpu.CompilerParams(dimension_semantics=("parallel",)),
    )(x, xp, wsrc, wtgt, wout)

    # second return: tgt.permute((0,2,3,1)).squeeze(1) == (bs, proximal, N)
    tgt = jnp.transpose(tgt_np, (0, 2, 1))
    return sq_pr, tgt


if __name__ == "__main__":
    bs, proximal_len, C, N = 2, 8, 4, 16
    Pp, K, model_d = 3, 4, 32
    number = 1

    key = jax.random.PRNGKey(0)
    k1, k2, k3, k4, k5 = jax.random.split(key, 5)
    x_pr = jax.random.normal(k1, (bs, proximal_len, C, N), jnp.float32)
    x_p = jax.random.normal(k2, (bs, Pp, proximal_len, C, N), jnp.float32)

    # Deterministic synthetic parameters for the "spatial" transformer proxy.
    w_src = jax.random.normal(k3, (proximal_len, model_d), jnp.float32) / math.sqrt(proximal_len)
    w_tgt = jax.random.normal(k4, (proximal_len, model_d), jnp.float32) / math.sqrt(proximal_len)
    w_out = jax.random.normal(k5, (model_d, proximal_len), jnp.float32) / math.sqrt(model_d)

    sq_pr, tgt = spatial_forward(x_pr, x_p, number, K, w_src, w_tgt, w_out)
    jax.block_until_ready((sq_pr, tgt))

    assert sq_pr.shape == (bs, N, proximal_len), sq_pr.shape
    assert tgt.shape == (bs, proximal_len, N), tgt.shape
    assert bool(jnp.all(jnp.isfinite(sq_pr))) and bool(jnp.all(jnp.isfinite(tgt)))

    # tgt is an exact f32 mean over the period axis -> cheap in-kernel correctness check.
    tgt_ref = jnp.mean(x_p[:, :, :, number, :], axis=1)      # (bs, proximal, N)
    assert bool(jnp.max(jnp.abs(tgt - tgt_ref)) < 1e-5)

    print("KERNEL_OK")
</pallas_src>

<mosaic_0001>
module attributes {stable_mosaic.version = 11 : i64} {
  func.func @_spatial_fused_kernel(%arg0: i32, %arg1: memref<1x4x16x8xf32, #tpu.memory_space<vmem>>, %arg2: memref<1x3x16x8xf32, #tpu.memory_space<vmem>>, %arg3: memref<8x32xbf16, #tpu.memory_space<vmem>>, %arg4: memref<8x32xbf16, #tpu.memory_space<vmem>>, %arg5: memref<32x8xbf16, #tpu.memory_space<vmem>>, %arg6: memref<1x16x8xf32, #tpu.memory_space<vmem>>, %arg7: memref<1x16x8xf32, #tpu.memory_space<vmem>>) attributes {dimension_semantics = [#tpu.dimension_semantics<parallel>], iteration_bounds = array<i64: 2>, scalar_prefetch = 0 : i64, scratch_operands = 0 : i64, tpu.core_type = #tpu.core_type<tc>, window_params = [{transform_indices = @transform_0, window_bounds = array<i64: 1, 4, 16, 8>}, {transform_indices = @transform_1, window_bounds = array<i64: 1, 3, 16, 8>}, {pipeline_mode = #tpu.pipeline_mode<synchronous>, transform_indices = @transform_2, window_bounds = array<i64: 8, 32>}, {pipeline_mode = #tpu.pipeline_mode<synchronous>, transform_indices = @transform_3, window_bounds = array<i64: 8, 32>}, {pipeline_mode = #tpu.pipeline_mode<synchronous>, transform_indices = @transform_4, window_bounds = array<i64: 32, 8>}, {transform_indices = @transform_5, window_bounds = array<i64: 1, 16, 8>}, {transform_indices = @transform_6, window_bounds = array<i64: 1, 16, 8>}]} {
    %c0 = arith.constant 0 : index
    %c0_0 = arith.constant 0 : index
    %c0_1 = arith.constant 0 : index
    %c0_2 = arith.constant 0 : index
    %0 = vector.load %arg1[%c0, %c0_0, %c0_1, %c0_2] : memref<1x4x16x8xf32, #tpu.memory_space<vmem>>, vector<1x4x16x8xf32>
    %1 = vector.shape_cast %0 : vector<1x4x16x8xf32> to vector<4x16x8xf32>
    %cst = arith.constant dense<0.000000e+00> : vector<16x8xf32>
    %2 = vector.multi_reduction <add>, %1, %cst [0] : vector<4x16x8xf32> to vector<16x8xf32>
    %cst_3 = arith.constant 4.000000e+00 : f32
    %3 = vector.broadcast %cst_3 : f32 to vector<16x8xf32>
    %4 = arith.divf %2, %3 : vector<16x8xf32>
    %cst_4 = arith.constant dense<0.000000e+00> : vector<16xf32>
    %5 = vector.multi_reduction <add>, %4, %cst_4 [1] : vector<16x8xf32> to vector<16xf32>
    %6 = vector.shape_cast %5 : vector<16xf32> to vector<16x1xf32>
    %cst_5 = arith.constant 8.000000e+00 : f32
    %7 = vector.broadcast %cst_5 : f32 to vector<16x1xf32>
    %8 = arith.divf %6, %7 : vector<16x1xf32>
    %9 = vector.broadcast %8 : vector<16x1xf32> to vector<16x8xf32>
    %10 = arith.subf %4, %9 : vector<16x8xf32>
    %11 = arith.mulf %10, %10 : vector<16x8xf32>
    %cst_6 = arith.constant dense<0.000000e+00> : vector<16xf32>
    %12 = vector.multi_reduction <add>, %11, %cst_6 [1] : vector<16x8xf32> to vector<16xf32>
    %13 = vector.shape_cast %12 : vector<16xf32> to vector<16x1xf32>
    %cst_7 = arith.constant 9.99999996E-13 : f32
    %14 = vector.broadcast %cst_7 : f32 to vector<16x1xf32>
    %15 = arith.addf %13, %14 : vector<16x1xf32>
    %16 = math.rsqrt %15 : vector<16x1xf32>
    %17 = vector.broadcast %16 : vector<16x1xf32> to vector<16x8xf32>
    %18 = arith.mulf %10, %17 : vector<16x8xf32>
    %19 = arith.truncf %18 : vector<16x8xf32> to vector<16x8xbf16>
    %cst_8 = arith.constant dense<0.000000e+00> : vector<16x16xf32>
    %20 = tpu.matmul %19, %19, %cst_8 {dimension_numbers = #tpu.dot_dimension_numbers<[1], [1], [0], [0], [0, 0, 1, 0], [], []>} : vector<16x8xbf16>, vector<16x8xbf16>, vector<16x16xf32> -> vector<16x16xf32>
    %c0_9 = arith.constant 0 : index
    %c0_10 = arith.constant 0 : index
    %c0_11 = arith.constant 0 : index
    %c0_12 = arith.constant 0 : index
    %21 = vector.load %arg2[%c0_9, %c0_10, %c0_11, %c0_12] : memref<1x3x16x8xf32, #tpu.memory_space<vmem>>, vector<1x3x16x8xf32>
    %22 = vector.shape_cast %21 : vector<1x3x16x8xf32> to vector<3x16x8xf32>
    %cst_13 = arith.constant dense<0.000000e+00> : vector<16x8xf32>
    %23 = vector.multi_reduction <add>, %22, %cst_13 [0] : vector<3x16x8xf32> to vector<16x8xf32>
    %cst_14 = arith.constant 3.000000e+00 : f32
    %24 = vector.broadcast %cst_14 : f32 to vector<16x8xf32>
    %25 = arith.divf %23, %24 : vector<16x8xf32>
    %26 = vector.extract_strided_slice %1 {offsets = [1, 0, 0], sizes = [1, 16, 8], strides = [1, 1, 1]} : vector<4x16x8xf32> to vector<1x16x8xf32>
    %27 = vector.shape_cast %26 : vector<1x16x8xf32> to vector<16x8xf32>
    %28 = arith.truncf %27 : vector<16x8xf32> to vector<16x8xbf16>
    %c0_15 = arith.constant 0 : index
    %c0_16 = arith.constant 0 : index
    %29 = vector.load %arg3[%c0_15, %c0_16] : memref<8x32xbf16, #tpu.memory_space<vmem>>, vector<8x32xbf16>
    %cst_17 = arith.constant dense<0.000000e+00> : vector<16x32xf32>
    %30 = tpu.matmul %28, %29, %cst_17 {dimension_numbers = #tpu.dot_dimension_numbers<[1], [0], [0], [1], [0, 0, 1, 1], [], []>} : vector<16x8xbf16>, vector<8x32xbf16>, vector<16x32xf32> -> vector<16x32xf32>
    %31 = arith.truncf %25 : vector<16x8xf32> to vector<16x8xbf16>
    %c0_18 = arith.constant 0 : index
    %c0_19 = arith.constant 0 : index
    %32 = vector.load %arg4[%c0_18, %c0_19] : memref<8x32xbf16, #tpu.memory_space<vmem>>, vector<8x32xbf16>
    %cst_20 = arith.constant dense<0.000000e+00> : vector<16x32xf32>
    %33 = tpu.matmul %31, %32, %cst_20 {dimension_numbers = #tpu.dot_dimension_numbers<[1], [0], [0], [1], [0, 0, 1, 1], [], []>} : vector<16x8xbf16>, vector<8x32xbf16>, vector<16x32xf32> -> vector<16x32xf32>
    %34 = arith.truncf %33 : vector<16x32xf32> to vector<16x32xbf16>
    %35 = arith.truncf %30 : vector<16x32xf32> to vector<16x32xbf16>
    %cst_21 = arith.constant dense<0.000000e+00> : vector<16x16xf32>
    %36 = tpu.matmul %34, %35, %cst_21 {dimension_numbers = #tpu.dot_dimension_numbers<[1], [1], [0], [0], [0, 0, 1, 0], [], []>} : vector<16x32xbf16>, vector<16x32xbf16>, vector<16x16xf32> -> vector<16x16xf32>
    %37 = tpu.iota {dimensions = array<i32: 1>} : vector<16x16xi32>
    %38 = arith.sitofp %37 : vector<16x16xi32> to vector<16x16xf32>
    %cst_22 = arith.constant dense<0xFF800000> : vector<16xf32>
    %39 = vector.multi_reduction <maximumf>, %20, %cst_22 [1] : vector<16x16xf32> to vector<16xf32>
    %40 = vector.shape_cast %39 : vector<16xf32> to vector<16x1xf32>
    %41 = vector.broadcast %40 : vector<16x1xf32> to vector<16x16xf32>
    %42 = arith.cmpf oeq, %20, %41 : vector<16x16xf32>
    %cst_23 = arith.constant 1.600000e+01 : f32
    %43 = vector.broadcast %cst_23 : f32 to vector<16x16xf32>
    %44 = arith.select %42, %38, %43 : vector<16x16xi1>, vector<16x16xf32>
    %cst_24 = arith.constant dense<0x7F800000> : vector<16xf32>
    %45 = vector.multi_reduction <minimumf>, %44, %cst_24 [1] : vector<16x16xf32> to vector<16xf32>
    %46 = vector.shape_cast %45 : vector<16xf32> to vector<16x1xf32>
    %47 = vector.broadcast %46 : vector<16x1xf32> to vector<16x16xf32>
    %48 = arith.cmpf oeq, %38, %47 : vector<16x16xf32>
    %cst_25 = arith.constant 0.000000e+00 : f32
    %49 = vector.broadcast %cst_25 : f32 to vector<16x16xf32>
    %50 = arith.select %48, %36, %49 : vector<16x16xi1>, vector<16x16xf32>
    %cst_26 = arith.constant dense<0.000000e+00> : vector<16xf32>
    %51 = vector.multi_reduction <add>, %50, %cst_26 [1] : vector<16x16xf32> to vector<16xf32>
    %52 = vector.shape_cast %51 : vector<16xf32> to vector<16x1xf32>
    %cst_27 = arith.constant 0.176776692 : f32
    %53 = vector.broadcast %cst_27 : f32 to vector<16x1xf32>
    %54 = arith.mulf %52, %53 : vector<16x1xf32>
    %cst_28 = arith.constant -1.000000e+09 : f32
    %55 = vector.broadcast %cst_28 : f32 to vector<16x16xf32>
    %56 = arith.select %48, %55, %20 : vector<16x16xi1>, vector<16x16xf32>
    %cst_29 = arith.constant dense<0xFF800000> : vector<16xf32>
    %57 = vector.multi_reduction <maximumf>, %56, %cst_29 [1] : vector<16x16xf32> to vector<16xf32>
    %58 = vector.shape_cast %57 : vector<16xf32> to vector<16x1xf32>
    %59 = vector.broadcast %58 : vector<16x1xf32> to vector<16x16xf32>
    %60 = arith.cmpf oeq, %56, %59 : vector<16x16xf32>
    %cst_30 = arith.constant 1.600000e+01 : f32
    %61 = vector.broadcast %cst_30 : f32 to vector<16x16xf32>
    %62 = arith.select %60, %38, %61 : vector<16x16xi1>, vector<16x16xf32>
    %cst_31 = arith.constant dense<0x7F800000> : vector<16xf32>
    %63 = vector.multi_reduction <minimumf>, %62, %cst_31 [1] : vector<16x16xf32> to vector<16xf32>
    %64 = vector.shape_cast %63 : vector<16xf32> to vector<16x1xf32>
    %65 = vector.broadcast %64 : vector<16x1xf32> to vector<16x16xf32>
    %66 = arith.cmpf oeq, %38, %65 : vector<16x16xf32>
    %cst_32 = arith.constant 0.000000e+00 : f32
    %67 = vector.broadcast %cst_32 : f32 to vector<16x16xf32>
    %68 = arith.select %66, %36, %67 : vector<16x16xi1>, vector<16x16xf32>
    %cst_33 = arith.constant dense<0.000000e+00> : vector<16xf32>
    %69 = vector.multi_reduction <add>, %68, %cst_33 [1] : vector<16x16xf32> to vector<16xf32>
    %70 = vector.shape_cast %69 : vector<16xf32> to vector<16x1xf32>
    %cst_34 = arith.constant 0.176776692 : f32
    %71 = vector.broadcast %cst_34 : f32 to vector<16x1xf32>
    %72 = arith.mulf %70, %71 : vector<16x1xf32>
    %cst_35 = arith.constant -1.000000e+09 : f32
    %73 = vector.broadcast %cst_35 : f32 to vector<16x16xf32>
    %74 = arith.select %66, %73, %56 : vector<16x16xi1>, vector<16x16xf32>
    %cst_36 = arith.constant dense<0xFF800000> : vector<16xf32>
    %75 = vector.multi_reduction <maximumf>, %74, %cst_36 [1] : vector<16x16xf32> to vector<16xf32>
    %76 = vector.shape_cast %75 : vector<16xf32> to vector<16x1xf32>
    %77 = vector.broadcast %76 : vector<16x1xf32> to vector<16x16xf32>
    %78 = arith.cmpf oeq, %74, %77 : vector<16x16xf32>
    %cst_37 = arith.constant 1.600000e+01 : f32
    %79 = vector.broadcast %cst_37 : f32 to vector<16x16xf32>
    %80 = arith.select %78, %38, %79 : vector<16x16xi1>, vector<16x16xf32>
    %cst_38 = arith.constant dense<0x7F800000> : vector<16xf32>
    %81 = vector.multi_reduction <minimumf>, %80, %cst_38 [1] : vector<16x16xf32> to vector<16xf32>
    %82 = vector.shape_cast %81 : vector<16xf32> to vector<16x1xf32>
    %83 = vector.broadcast %82 : vector<16x1xf32> to vector<16x16xf32>
    %84 = arith.cmpf oeq, %38, %83 : vector<16x16xf32>
    %cst_39 = arith.constant 0.000000e+00 : f32
    %85 = vector.broadcast %cst_39 : f32 to vector<16x16xf32>
    %86 = arith.select %84, %36, %85 : vector<16x16xi1>, vector<16x16xf32>
    %cst_40 = arith.constant dense<0.000000e+00> : vector<16xf32>
    %87 = vector.multi_reduction <add>, %86, %cst_40 [1] : vector<16x16xf32> to vector<16xf32>
    %88 = vector.shape_cast %87 : vector<16xf32> to vector<16x1xf32>
    %cst_41 = arith.constant 0.176776692 : f32
    %89 = vector.broadcast %cst_41 : f32 to vector<16x1xf32>
    %90 = arith.mulf %88, %89 : vector<16x1xf32>
    %cst_42 = arith.constant -1.000000e+09 : f32
    %91 = vector.broadcast %cst_42 : f32 to vector<16x16xf32>
    %92 = arith.select %84, %91, %74 : vector<16x16xi1>, vector<16x16xf32>
    %cst_43 = arith.constant dense<0xFF800000> : vector<16xf32>
    %93 = vector.multi_reduction <maximumf>, %92, %cst_43 [1] : vector<16x16xf32> to vector<16xf32>
    %94 = vector.shape_cast %93 : vector<16xf32> to vector<16x1xf32>
    %95 = vector.broadcast %94 : vector<16x1xf32> to vector<16x16xf32>
    %96 = arith.cmpf oeq, %92, %95 : vector<16x16xf32>
    %cst_44 = arith.constant 1.600000e+01 : f32
    %97 = vector.broadcast %cst_44 : f32 to vector<16x16xf32>
    %98 = arith.select %96, %38, %97 : vector<16x16xi1>, vector<16x16xf32>
    %cst_45 = arith.constant dense<0x7F800000> : vector<16xf32>
    %99 = vector.multi_reduction <minimumf>, %98, %cst_45 [1] : vector<16x16xf32> to vector<16xf32>
    %100 = vector.shape_cast %99 : vector<16xf32> to vector<16x1xf32>
    %101 = vector.broadcast %100 : vector<16x1xf32> to vector<16x16xf32>
    %102 = arith.cmpf oeq, %38, %101 : vector<16x16xf32>
    %cst_46 = arith.constant 0.000000e+00 : f32
    %103 = vector.broadcast %cst_46 : f32 to vector<16x16xf32>
    %104 = arith.select %102, %36, %103 : vector<16x16xi1>, vector<16x16xf32>
    %cst_47 = arith.constant dense<0.000000e+00> : vector<16xf32>
    %105 = vector.multi_reduction <add>, %104, %cst_47 [1] : vector<16x16xf32> to vector<16xf32>
    %106 = vector.shape_cast %105 : vector<16xf32> to vector<16x1xf32>
    %cst_48 = arith.constant 0.176776692 : f32
    %107 = vector.broadcast %cst_48 : f32 to vector<16x1xf32>
    %108 = arith.mulf %106, %107 : vector<16x1xf32>
    %109 = arith.maximumf %54, %72 : vector<16x1xf32>
    %110 = arith.maximumf %109, %90 : vector<16x1xf32>
    %111 = arith.maximumf %110, %108 : vector<16x1xf32>
    %112 = arith.subf %54, %111 : vector<16x1xf32>
    %113 = math.exp %112 : vector<16x1xf32>
    %114 = arith.subf %72, %111 : vector<16x1xf32>
    %115 = math.exp %114 : vector<16x1xf32>
    %116 = arith.subf %90, %111 : vector<16x1xf32>
    %117 = math.exp %116 : vector<16x1xf32>
    %118 = arith.subf %108, %111 : vector<16x1xf32>
    %119 = math.exp %118 : vector<16x1xf32>
    %120 = arith.addf %113, %115 : vector<16x1xf32>
    %121 = arith.addf %120, %117 : vector<16x1xf32>
    %122 = arith.addf %121, %119 : vector<16x1xf32>
    %123 = tpu.reciprocal %122 {approx = true} : vector<16x1xf32> -> vector<16x1xf32>
    %124 = arith.mulf %113, %123 : vector<16x1xf32>
    %125 = arith.extui %48 : vector<16x16xi1> to vector<16x16xi32>
    %126 = arith.sitofp %125 : vector<16x16xi32> to vector<16x16xf32>
    %127 = vector.broadcast %124 : vector<16x1xf32> to vector<16x16xf32>
    %128 = arith.mulf %127, %126 : vector<16x16xf32>
    %129 = arith.mulf %115, %123 : vector<16x1xf32>
    %130 = arith.extui %66 : vector<16x16xi1> to vector<16x16xi32>
    %131 = arith.sitofp %130 : vector<16x16xi32> to vector<16x16xf32>
    %132 = vector.broadcast %129 : vector<16x1xf32> to vector<16x16xf32>
    %133 = arith.mulf %132, %131 : vector<16x16xf32>
    %134 = arith.addf %128, %133 : vector<16x16xf32>
    %135 = arith.mulf %117, %123 : vector<16x1xf32>
    %136 = arith.extui %84 : vector<16x16xi1> to vector<16x16xi32>
    %137 = arith.sitofp %136 : vector<16x16xi32> to vector<16x16xf32>
    %138 = vector.broadcast %135 : vector<16x1xf32> to vector<16x16xf32>
    %139 = arith.mulf %138, %137 : vector<16x16xf32>
    %140 = arith.addf %134, %139 : vector<16x16xf32>
    %141 = arith.mulf %119, %123 : vector<16x1xf32>
    %142 = arith.extui %102 : vector<16x16xi1> to vector<16x16xi32>
    %143 = arith.sitofp %142 : vector<16x16xi32> to vector<16x16xf32>
    %144 = vector.broadcast %141 : vector<16x1xf32> to vector<16x16xf32>
    %145 = arith.mulf %144, %143 : vector<16x16xf32>
    %146 = arith.addf %140, %145 : vector<16x16xf32>
    %147 = arith.truncf %146 : vector<16x16xf32> to vector<16x16xbf16>
    %148 = arith.truncf %30 : vector<16x32xf32> to vector<16x32xbf16>
    %cst_49 = arith.constant dense<0.000000e+00> : vector<16x32xf32>
    %149 = tpu.matmul %147, %148, %cst_49 {dimension_numbers = #tpu.dot_dimension_numbers<[1], [0], [0], [1], [0, 0, 1, 1], [], []>} : vector<16x16xbf16>, vector<16x32xbf16>, vector<16x32xf32> -> vector<16x32xf32>
    %150 = arith.truncf %149 : vector<16x32xf32> to vector<16x32xbf16>
    %c0_50 = arith.constant 0 : index
    %c0_51 = arith.constant 0 : index
    %151 = vector.load %arg5[%c0_50, %c0_51] : memref<32x8xbf16, #tpu.memory_space<vmem>>, vector<32x8xbf16>
    %cst_52 = arith.constant dense<0.000000e+00> : vector<16x8xf32>
    %152 = tpu.matmul %150, %151, %cst_52 {dimension_numbers = #tpu.dot_dimension_numbers<[1], [0], [0], [1], [0, 0, 1, 1], [], []>} : vector<16x32xbf16>, vector<32x8xbf16>, vector<16x8xf32> -> vector<16x8xf32>
    %c0_53 = arith.constant 0 : index
    %c0_54 = arith.constant 0 : index
    %c0_55 = arith.constant 0 : index
    %153 = vector.load %arg6[%c0_53, %c0_54, %c0_55] : memref<1x16x8xf32, #tpu.memory_space<vmem>>, vector<1x16x8xf32>
    %154 = vector.shape_cast %153 : vector<1x16x8xf32> to vector<16x8xf32>
    %155 = vector.shape_cast %152 : vector<16x8xf32> to vector<1x16x8xf32>
    tpu.vector_store %arg6[%c0_53, %c0_54, %c0_55], %155 {strides = array<i32>} : memref<1x16x8xf32, #tpu.memory_space<vmem>>, vector<1x16x8xf32>,
    %c0_56 = arith.constant 0 : index
    %c0_57 = arith.constant 0 : index
    %c0_58 = arith.constant 0 : index
    %156 = vector.load %arg7[%c0_56, %c0_57, %c0_58] : memref<1x16x8xf32, #tpu.memory_space<vmem>>, vector<1x16x8xf32>
    %157 = vector.shape_cast %156 : vector<1x16x8xf32> to vector<16x8xf32>
    %158 = vector.shape_cast %25 : vector<16x8xf32> to vector<1x16x8xf32>
    tpu.vector_store %arg7[%c0_56, %c0_57, %c0_58], %158 {strides = array<i32>} : memref<1x16x8xf32, #tpu.memory_space<vmem>>, vector<1x16x8xf32>,
    return
  }
  func.func @transform_0(%arg0: i32) -> (i32, i32, i32, i32) {
    %c0_i32 = arith.constant 0 : i32
    %c0_i32_0 = arith.constant 0 : i32
    %c0_i32_1 = arith.constant 0 : i32
    %c0_i32_2 = arith.constant 0 : i32
    return %arg0, %c0_i32, %c0_i32_0, %c0_i32_1 : i32, i32, i32, i32
  }
  func.func @transform_1(%arg0: i32) -> (i32, i32, i32, i32) {
    %c0_i32 = arith.constant 0 : i32
    %c0_i32_0 = arith.constant 0 : i32
    %c0_i32_1 = arith.constant 0 : i32
    %c0_i32_2 = arith.constant 0 : i32
    return %arg0, %c0_i32, %c0_i32_0, %c0_i32_1 : i32, i32, i32, i32
  }
  func.func @transform_2(%arg0: i32) -> (i32, i32) {
    %c0_i32 = arith.constant 0 : i32
    %c0_i32_0 = arith.constant 0 : i32
    %c0_i32_1 = arith.constant 0 : i32
    return %c0_i32, %c0_i32_0 : i32, i32
  }
  func.func @transform_3(%arg0: i32) -> (i32, i32) {
    %c0_i32 = arith.constant 0 : i32
    %c0_i32_0 = arith.constant 0 : i32
    %c0_i32_1 = arith.constant 0 : i32
    return %c0_i32, %c0_i32_0 : i32, i32
  }
  func.func @transform_4(%arg0: i32) -> (i32, i32) {
    %c0_i32 = arith.constant 0 : i32
    %c0_i32_0 = arith.constant 0 : i32
    %c0_i32_1 = arith.constant 0 : i32
    return %c0_i32, %c0_i32_0 : i32, i32
  }
  func.func @transform_5(%arg0: i32) -> (i32, i32, i32) {
    %c0_i32 = arith.constant 0 : i32
    %c0_i32_0 = arith.constant 0 : i32
    %c0_i32_1 = arith.constant 0 : i32
    return %arg0, %c0_i32, %c0_i32_0 : i32, i32, i32
  }
  func.func @transform_6(%arg0: i32) -> (i32, i32, i32) {
    %c0_i32 = arith.constant 0 : i32
    %c0_i32_0 = arith.constant 0 : i32
    %c0_i32_1 = arith.constant 0 : i32
    return %arg0, %c0_i32, %c0_i32_0 : i32, i32, i32
  }
}

</mosaic_0001>

<bundles_post_ra>
// kernel: spatial_forward.1
= control target key start
LH: loop header
LB: loop body
LE: loop exit
PB: predicated region body
PF: predicated region fallthrough
CT: control target
= control target key end

     0   :  { %s1124_s21 = smov 0   ;;  %s1377_s0 = inlined_call_operand.vmem [shape: f32[2,4,16,8], index: 0, kind: input, shape index: {}]   ;;  %s1378_s1 = inlined_call_operand.vmem [shape: f32[2,3,16,8], index: 1, kind: input, shape index: {}]   ;;  %s1379_s2 = inlined_call_operand.vmem [shape: bf16[8,32], index: 2, kind: input, shape index: {}]   ;;  %s1380_s3 = inlined_call_operand.vmem [shape: bf16[8,32], index: 3, kind: input, shape index: {}]   ;;  %s1381_s4 = inlined_call_operand.vmem [shape: bf16[32,8], index: 4, kind: input, shape index: {}]   ;;  %s1382_s5 = inlined_call_operand.vmem [shape: f32[2,16,8], index: 5, kind: output, shape index: {0}]   ;;  %s1383_s6 = inlined_call_operand.vmem [shape: f32[2,16,8], index: 6, kind: output, shape index: {1}]  }
   0x1 LB: > { %s958_s22 = sadd.s32 4294967295, %s1085_s21   ;;  %p962_p0 = scmp.ge.s32.totalorder %s1085_s21, 1  ;;  %s1085_s21 = sphi %s1124_s21, %s17_s21  }
   0x2   : > { %p225_p1 = scmp.lt.s32.totalorder %s1085_s21, 3 }
   0x4   : > { %p226_p2 = pnand %p962_p0, %p225_p1 }
   0x5   : > { %p265_p3 = scmp.lt.s32.totalorder (!%p226_p2), %s958_s22, 1 }
   0x6   : > { %229 = sbr.rel (%p226_p2) target bundleno = 2258 (0x8d2), region = 40 }
   0xb   : > { %s1385_s22 = smov (!%p265_p3, %s958_s22), 1  ;;  %vm294_vm0 = vcmask 64512   ;;  %v1087_v36 = vmov 0.0   ;;  %vm1088_vm1 = vmmov 0   ;;  %v402_v37 = vld [vmem:[%s1379_s2] sm:$0xf] }
   0xc   : > { %s988_s23 = sshll.u32 %s1385_s22, 6  ;;  %1004 = vmatprep.subr.bf16.mxu0 %v1087_v36  ;;  %1010 = vmatprep.subr.bf16.mxu1 %v1087_v36  ;;  %vm406_vm2 = vcmask 1043456   ;;  %v452_v38 = vld [vmem:[%s1380_s3] sm:$0xf]  ;;  %s1042_s7 = smul.u32 48, %s1385_s22  ;;  %vm502_vm3 = vcmask 261120  }
   0xd   : > { %s269_s26 = scalar_lea.vmem %s1377_s0, %s988_s23  ;;  %1006 = vmatprep.mubr.msk.bf16.mxu0 %vm1088_vm1, %v1087_v36  ;;  %1012 = vmatprep.mubr.msk.bf16.mxu1 %vm1088_vm1, %v1087_v36  ;;  %v408_v39 = vsel %vm406_vm2, %v402_v37, 0  ;;  %v457_v41 = vsel %vm406_vm2, %v452_v38, 0  ;;  %vm553_vm4 = vcmask 130048   ;;  %s989_s15 = sshll.u32 %s1385_s22, 4 }
   0xe   : > { %v286_v0 = vld [vmem:[%s269_s26] sm:$0xff]  ;;  %v1138_v1 = vld [vmem:[%s269_s26 + $0x10] sm:$0xff]  ;;  %v287_v7 = vld [vmem:[%s269_s26 + $0x8] sm:$0xff]  ;;  %1011 = vmatpush3.bf16.msra.mxu1 %v408_v39  ;;  %s274_s10 = scalar_lea.vmem %s1378_s1, %s1042_s7  ;;  %s284_s18 = scalar_lea.vmem %s1383_s6, %s989_s15 }
   0xf   : > { %v290_v2 = vld [vmem:[%s269_s26 + $0x20] sm:$0xff]  ;;  %v292_v3 = vld [vmem:[%s269_s26 + $0x30] sm:$0xff]  ;;  %v295_v4 = vsel %vm294_vm0, %v286_v0, 0.0  ;;  %v296_v5 = vsel %vm294_vm0, %v1138_v1, 0.0  ;;  %v289_v8 = vld [vmem:[%s269_s26 + $0x18] sm:$0xff]  ;;  %v302_v12 = vsel %vm294_vm0, %v287_v7, 0.0  ;;  %1016 = vmatprep.subr.bf16.mxu1 %v1087_v36  ;;  %s279_s22 = scalar_lea.vmem %s1382_s5, %s989_s15 }
  0x10   : > { %v298_v6 = vsel %vm294_vm0, %v290_v2, 0.0  ;;  %v297_v9 = vadd.f32 %v296_v5, %v295_v4  ;;  %v291_v10 = vld [vmem:[%s269_s26 + $0x28] sm:$0xff]  ;;  %v293_v11 = vld [vmem:[%s269_s26 + $0x38] sm:$0xff]  ;;  %v303_v13 = vsel %vm294_vm0, %v289_v8, 0.0  ;;  %v300_v14 = vsel %vm294_vm0, %v292_v3, 0.0  ;;  %v382_v42 = vld [vmem:[%s274_s10] sm:$0xff] }
  0x11   : > { %v304_v15 = vadd.f32 %v303_v13, %v302_v12  ;;  %v305_v16 = vsel %vm294_vm0, %v291_v10, 0.0  ;;  %v307_v18 = vsel %vm294_vm0, %v293_v11, 0.0  ;;  %v401_v40 = vpack.c.bf16 %v289_v8, %v1138_v1  ;;  %v383_v43 = vld [vmem:[%s274_s10 + $0x8] sm:$0xff]  ;;  %v384_v44 = vld [vmem:[%s274_s10 + $0x10] sm:$0xff]  ;;  %v385_v45 = vld [vmem:[%s274_s10 + $0x18] sm:$0xff] }
  0x12   : > { %v299_v17 = vadd.f32 %v298_v6, %v297_v9  ;;  %v386_v46 = vld [vmem:[%s274_s10 + $0x20] sm:$0xff]  ;;  %v387_v47 = vld [vmem:[%s274_s10 + $0x28] sm:$0xff]  ;;  %v388_v48 = vsel %vm294_vm0, %v382_v42, 0.0  ;;  %v389_v49 = vsel %vm294_vm0, %v384_v44, 0.0  ;;  %v393_v50 = vsel %vm294_vm0, %v383_v43, 0.0 }
  0x13   : > { %v306_v19 = vadd.f32 %v305_v16, %v304_v15  ;;  %1013 = vmatmul.mubr.msk.bf16.vlgmr.msra.gmra.mxu1 %vm294_vm0, %v401_v40  ;;  %v390_v51 = vadd.f32 %v389_v49, %v388_v48  ;;  %v391_v52 = vsel %vm294_vm0, %v386_v46, 0.0  ;;  %v394_v53 = vsel %vm294_vm0, %v385_v45, 0.0 }
  0x14   : > { %v301_v20 = vadd.f32 %v300_v14, %v299_v17  ;;  %v396_v54 = vsel %vm294_vm0, %v387_v47, 0.0  ;;  %1017 = vmatpush3.bf16.msra.mxu1 %v457_v41  ;;  %1018 = vmatprep.mubr.msk.bf16.mxu1 %vm1088_vm1, %v1087_v36  ;;  %v395_v55 = vadd.f32 %v394_v53, %v393_v50 }
  0x15   : > { %v308_v21 = vadd.f32 %v307_v18, %v306_v19  ;;  %v392_v56 = vadd.f32 %v391_v52, %v390_v51  ;;  %1028 = vmatprep.subr.bf16.mxu1 %v1087_v36 }
  0x16   : > { %v310_v22 = vmul.f32 0.25, %v301_v20  ;;  %v397_v57 = vadd.f32 %v396_v54, %v395_v55 }
  0x17   : > { %v311_v23 = vmul.f32 0.25, %v308_v21  ;;  %v1181_v58 = vmul.f32 0.33333334, %v392_v56 }
  0x18   : > { %v312_v24 = vsel %vm294_vm0, %v310_v22, 0.0  ;;  %v1183_v59 = vmul.f32 0.33333334, %v397_v57 }
  0x19   : > { %313 = vadd.xlane.f32.xlu0 %v312_v24  ;;  %v315_v25 = vsel %vm294_vm0, %v311_v23, 0.0  ;;  %v550_v24 = vlaneseq  ;;  %856 = vst.msk [vmem:[%s284_s18] sm:$0xff] %vm294_vm0, %v1181_v58 }
  0x1a   : > { %v451_v60 = vpack.c.bf16 %v1183_v59, %v1181_v58  ;;  %857 = vst.msk [vmem:[%s284_s18 + $0x8] sm:$0xff] %vm294_vm0, %v1183_v59 }
  0x1c   : > { %1019 = vmatmul.mubr.msk.bf16.vlgmr.msra.gmra.mxu1 %vm294_vm0, %v451_v60 }
  0x1d   : > { %316 = vadd.xlane.f32.xlu0 %v315_v25  ;;  %1030 = vmatprep.mubr.msk.bf16.mxu1 %vm1088_vm1, %v1087_v36  ;;  %v551_v25 = vand.u32 127, %v550_v24 }
  0xa2   : > { %v314_v26 = vpop.xlane.xlu0 %313 }
  0xa3   : > { %v319_v27 = vmul.f32 0.125, %v314_v26  ;;  %v1202_v26 = vcvt.s32.f32 %v551_v25 }
  0xa5   : > { %v321_v28 = vsub.f32 %v310_v22, %v319_v27 }
  0xa6   : > { %v317_v29 = vpop.xlane.xlu0 %316 }
  0xa7   : > { %v320_v30 = vmul.f32 0.125, %v317_v29  ;;  %v323_v31 = vmul.f32 %v321_v28, %v321_v28 }
  0xa9   : > { %v322_v32 = vsub.f32 %v311_v23, %v320_v30  ;;  %v325_v33 = vsel %vm294_vm0, %v323_v31, 0.0 }
  0xaa   : > { %326 = vadd.xlane.f32.xlu1 %v325_v33 }
  0xab   : > { %v324_v34 = vmul.f32 %v322_v32, %v322_v32 }
  0xad   : > { %v328_v35 = vsel %vm294_vm0, %v324_v34, 0.0 }
  0xae   : > { %329 = vadd.xlane.f32.xlu1 %v328_v35 }
  0xd3   : > { %v444_v7 = vpop.f32.mrf.mxu1 }
  0xd5   : > { %v1014_v8 = vpop.f32.mrf.mxu1 }
  0xd7   : > { %v447_v9 = vpop.f32.mrf.mxu1 }
  0xd8   : > { %v501_v10 = vpack.c.bf16 %v447_v9, %v444_v7 }
  0xd9   : > { %v1015_v11 = vpop.f32.mrf.mxu1 }
  0xda   : > { %v507_v12 = vsel %vm502_vm3, %v501_v10, 0  ;;  %1029 = vmatpush3.bf16.msra.mxu1 %v501_v10 }
  0xdc   : > { %v493_v13 = vpop.f32.mrf.mxu1 }
  0xde   : > { %v1020_v14 = vpop.f32.mrf.mxu1 }
  0xe0   : > { %v496_v15 = vpop.f32.mrf.mxu1 }
  0xe1   : > { %v500_v16 = vpack.c.bf16 %v496_v15, %v493_v13 }
  0xe2   : > { %v1021_v17 = vpop.f32.mrf.mxu1 }
 0x133   : > { %v327_v61 = vpop.xlane.xlu1 %326 }
 0x134   : > { %v331_v62 = vadd.f32 1e-12, %v327_v61 }
 0x136   : > { %1055 = vrsqrt.f32 %v331_v62 }
 0x137   : > { %v330_v63 = vpop.xlane.xlu1 %329 }
 0x138   : > { %v332_v0 = vadd.f32 1e-12, %v330_v63 }
 0x13a   : > { %1057 = vrsqrt.f32 %v332_v0 }
 0x143   : > { %v1056_v1 = vpop.eup %1055 }
 0x144   : > { %v335_v3 = vmul.f32 %v1056_v1, %v321_v28 }
 0x147   : > { %v1058_v2 = vpop.eup %1057 }
 0x148   : > { %v336_v4 = vmul.f32 %v1058_v2, %v322_v32 }
 0x14a   : > { %v337_v5 = vpack.c.bf16 %v336_v4, %v335_v3 }
 0x14c   : > { %v339_v6 = vsel %vm294_vm0, %v337_v5, 0 }
 0x14d   : > { %1005 = vmatpush3.bf16.xpose.msra.mxu0 %v339_v6 }
 0x14e   : > { %1022 = vmatprep.subr.bf16.mxu0 %v1087_v36 }
 0x154   : > { %1007 = vmatmul.mubr.msk.bf16.vlgmr.msra.gmra.mxu0 %vm294_vm0, %v337_v5 }
 0x155   : > { %1024 = vmatprep.mubr.msk.bf16.mxu0 %vm1088_vm1, %v1087_v36  ;;  %1023 = vmatpush3.bf16.xpose.msra.mxu0 %v507_v12 }
 0x156   : > { %1034 = vmatprep.subr.bf16.mxu0 %v1087_v36 }
 0x15c   : > { %1025 = vmatmul.mubr.msk.bf16.vlgmr.msra.gmra.mxu0 %vm502_vm3, %v500_v16 }
 0x15d   : > { %1038 = vmatprep.mubr.msk.bf16.mxu0 %vm1088_vm1, %v1087_v36 }
 0x214   : > { %v375_v18 = vpop.f32.mrf.mxu0 }
 0x215   : > { %v554_v19 = vsel %vm553_vm4, %v375_v18, -inf }
 0x216   : > { %555 = vmax.xlane.f32.xlu0 %v554_v19  ;;  %v1008_v20 = vpop.f32.mrf.mxu0 }
 0x218   : > { %v378_v21 = vpop.f32.mrf.mxu0 }
 0x219   : > { %v557_v22 = vsel %vm553_vm4, %v378_v21, -inf }
 0x21a   : > { %558 = vmax.xlane.f32.xlu1 %v557_v22  ;;  %v1009_v23 = vpop.f32.mrf.mxu0 }
 0x21c   : > { %v1208_v33 = vpop.f32.mrf.mxu0 }
 0x21e   : > { %v1026_v34 = vpop.f32.mrf.mxu0 }
 0x220   : > { %v1210_v35 = vpop.f32.mrf.mxu0 }
 0x222   : > { %v1027_v37 = vpop.f32.mrf.mxu0 }
 0x29f   : > { %v556_v27 = vpop.xlane.xlu0 %555 }
 0x2a0   : > { %vm560_vm5 = vcmp.eq.f32.partialorder %v375_v18, %v556_v27 }
 0x2a1   : > { %v562_v28 = vsel %vm560_vm5, %v1202_v26, 16.0 }
 0x2a2   : > { %v564_v29 = vsel %vm553_vm4, %v562_v28, inf }
 0x2a3   : > { %565 = vmin.xlane.f32.xlu0 %v564_v29  ;;  %v559_v30 = vpop.xlane.xlu1 %558 }
 0x2a4   : > { %vm561_vm6 = vcmp.eq.f32.partialorder %v378_v21, %v559_v30 }
 0x2a5   : > { %v563_v31 = vsel %vm561_vm6, %v1202_v26, 16.0 }
 0x2a6   : > { %v567_v32 = vsel %vm553_vm4, %v563_v31, inf  ;;  %v1053_v31 = vld [vmem:[%s1381_s4 + $0x8] sm:$0xff]  }
 0x2a7   : > { %568 = vmin.xlane.f32.xlu1 %v567_v32  ;;  %1035 = vmatpush3.bf16.msra.mxu0 %v1053_v31 }
 0x2a8   : > { %1036 = vmatprep.subr.bf16.mxu0 %v1087_v36 }
 0x32c   : > { %v1212_v38 = vpop.xlane.xlu0 %565 }
 0x32d   : > { %vm570_vm7 = vcmp.eq.f32.partialorder %v1202_v26, %v1212_v38 }
 0x32e   : > { %v582_v39 = vsel %vm570_vm7, -1e+09, %v375_v18  ;;  %v572_v10 = vsel %vm570_vm7, %v1208_v33, 0.0 }
 0x32f   : > { %v584_v40 = vsel %vm553_vm4, %v582_v39, -inf  ;;  %v574_v13 = vsel %vm553_vm4, %v572_v10, 0.0 }
 0x330   : > { %585 = vmax.xlane.f32.xlu0 %v584_v40  ;;  %v1220_v41 = vpop.xlane.xlu1 %568 }
 0x331   : > { %vm571_vm8 = vcmp.eq.f32.partialorder %v1202_v26, %v1220_v41 }
 0x332   : > { %v583_v42 = vsel %vm571_vm8, -1e+09, %v378_v21  ;;  %v573_v15 = vsel %vm571_vm8, %v1210_v35, 0.0 }
 0x333   : > { %v587_v43 = vsel %vm553_vm4, %v583_v42, -inf  ;;  %v577_v17 = vsel %vm553_vm4, %v573_v15, 0.0 }
 0x334   : > { %588 = vmax.xlane.f32.xlu1 %v587_v43 }
 0x3b9   : > { %v586_v44 = vpop.xlane.xlu0 %585 }
 0x3ba   : > { %vm590_vm9 = vcmp.eq.f32.partialorder %v582_v39, %v586_v44 }
 0x3bb   : > { %v592_v45 = vsel %vm590_vm9, %v1202_v26, 16.0 }
 0x3bc   : > { %v594_v46 = vsel %vm553_vm4, %v592_v45, inf }
 0x3bd   : > { %595 = vmin.xlane.f32.xlu0 %v594_v46  ;;  %v589_v47 = vpop.xlane.xlu1 %588 }
 0x3be   : > { %vm591_vm10 = vcmp.eq.f32.partialorder %v583_v42, %v589_v47 }
 0x3bf   : > { %v593_v48 = vsel %vm591_vm10, %v1202_v26, 16.0 }
 0x3c0   : > { %v597_v49 = vsel %vm553_vm4, %v593_v48, inf }
 0x3c1   : > { %598 = vmin.xlane.f32.xlu1 %v597_v49 }
 0x446   : > { %v1232_v50 = vpop.xlane.xlu0 %595 }
 0x447   : > { %vm600_vm11 = vcmp.eq.f32.partialorder %v1202_v26, %v1232_v50 }
 0x448   : > { %v612_v51 = vsel %vm600_vm11, -1e+09, %v582_v39  ;;  %v602_v14 = vsel %vm600_vm11, %v1208_v33, 0.0 }
 0x449   : > { %v614_v52 = vsel %vm553_vm4, %v612_v51, -inf  ;;  %v604_v16 = vsel %vm553_vm4, %v602_v14, 0.0 }
 0x44a   : > { %615 = vmax.xlane.f32.xlu0 %v614_v52  ;;  %v1240_v53 = vpop.xlane.xlu1 %598 }
 0x44b   : > { %vm601_vm12 = vcmp.eq.f32.partialorder %v1202_v26, %v1240_v53 }
 0x44c   : > { %v613_v54 = vsel %vm601_vm12, -1e+09, %v583_v42  ;;  %v603_v19 = vsel %vm601_vm12, %v1210_v35, 0.0 }
 0x44d   : > { %v617_v55 = vsel %vm553_vm4, %v613_v54, -inf  ;;  %v607_v21 = vsel %vm553_vm4, %v603_v19, 0.0 }
 0x44e   : > { %618 = vmax.xlane.f32.xlu1 %v617_v55 }
 0x4d3   : > { %v616_v56 = vpop.xlane.xlu0 %615 }
 0x4d4   : > { %vm620_vm13 = vcmp.eq.f32.partialorder %v612_v51, %v616_v56 }
 0x4d5   : > { %v622_v57 = vsel %vm620_vm13, %v1202_v26, 16.0 }
 0x4d6   : > { %v624_v60 = vsel %vm553_vm4, %v622_v57, inf }
 0x4d7   : > { %625 = vmin.xlane.f32.xlu0 %v624_v60  ;;  %v619_v61 = vpop.xlane.xlu1 %618 }
 0x4d8   : > { %vm621_vm14 = vcmp.eq.f32.partialorder %v613_v54, %v619_v61 }
 0x4d9   : > { %v623_v62 = vsel %vm621_vm14, %v1202_v26, 16.0 }
 0x4da   : > { %v627_v63 = vsel %vm553_vm4, %v623_v62, inf }
 0x4db   : > { %628 = vmin.xlane.f32.xlu1 %v627_v63 }
 0x560   : > { %v1252_v0 = vpop.xlane.xlu0 %625 }
 0x561   : > { %vm630_vm15 = vcmp.eq.f32.partialorder %v1202_v26, %v1252_v0  ;;  %v977_v0 = vsel %vm601_vm12, 1.0, %v1087_v36 }
 0x562   : > { %v642_v1 = vsel %vm630_vm15, -1e+09, %v612_v51  ;;  %v632_v18 = vsel %vm630_vm15, %v1208_v33, 0.0 }
 0x563   : > { %v644_v2 = vsel %vm553_vm4, %v642_v1, -inf  ;;  %v634_v20 = vsel %vm553_vm4, %v632_v18, 0.0 }
 0x564   : > { %645 = vmax.xlane.f32.xlu0 %v644_v2  ;;  %v1260_v3 = vpop.xlane.xlu1 %628 }
 0x565   : > { %vm631_vm1 = vcmp.eq.f32.partialorder %v1202_v26, %v1260_v3 }
 0x566   : > { %v643_v4 = vsel %vm631_vm1, -1e+09, %v613_v54  ;;  %v633_v22 = vsel %vm631_vm1, %v1210_v35, 0.0 }
 0x567   : > { %v647_v5 = vsel %vm553_vm4, %v643_v4, -inf  ;;  %v637_v23 = vsel %vm553_vm4, %v633_v22, 0.0 }
 0x568   : > { %648 = vmax.xlane.f32.xlu1 %v647_v5 }
 0x5ed   : > { %v646_v6 = vpop.xlane.xlu0 %645 }
 0x5ee   : > { %vm650_vm2 = vcmp.eq.f32.partialorder %v642_v1, %v646_v6 }
 0x5ef   : > { %v652_v7 = vsel %vm650_vm2, %v1202_v26, 16.0 }
 0x5f0   : > { %v654_v8 = vsel %vm553_vm4, %v652_v7, inf }
 0x5f1   : > { %655 = vmin.xlane.f32.xlu0 %v654_v8  ;;  %v649_v9 = vpop.xlane.xlu1 %648 }
 0x5f2   : > { %vm651_vm5 = vcmp.eq.f32.partialorder %v643_v4, %v649_v9 }
 0x5f3   : > { %v653_v11 = vsel %vm651_vm5, %v1202_v26, 16.0 }
 0x5f4   : > { %v657_v12 = vsel %vm553_vm4, %v653_v11, inf }
 0x5f5   : > { %658 = vmin.xlane.f32.xlu1 %v657_v12  ;;  %575 = vadd.xlane.f32.xlu0 %v574_v13 }
 0x5f9   : > { %605 = vadd.xlane.f32.xlu0 %v604_v16  ;;  %578 = vadd.xlane.f32.xlu1 %v577_v17 }
 0x5fd   : > { %635 = vadd.xlane.f32.xlu0 %v634_v20  ;;  %608 = vadd.xlane.f32.xlu1 %v607_v21 }
 0x601   : > { %638 = vadd.xlane.f32.xlu1 %v637_v23 }
 0x67a   : > { %v1302_v24 = vpop.xlane.xlu0 %655 }
 0x67b   : > { %vm660_vm6 = vcmp.eq.f32.partialorder %v1202_v26, %v1302_v24 }
 0x67c   : > { %v662_v25 = vsel %vm660_vm6, %v1208_v33, 0.0  ;;  %v980_v38 = vsel %vm660_vm6, 1.0, %v1087_v36 }
 0x67d   : > { %v664_v27 = vsel %vm553_vm4, %v662_v25, 0.0 }
 0x67e   : > { %v1311_v28 = vpop.xlane.xlu1 %658  ;;  %665 = vadd.xlane.f32.xlu0 %v664_v27  ;;  %v576_v32 = vpop.xlane.xlu0 %575 }
 0x67f   : > { %vm661_vm9 = vcmp.eq.f32.partialorder %v1202_v26, %v1311_v28  ;;  %v580_v42 = vmul.f32 0.17677669, %v576_v32 }
 0x680   : > { %v663_v29 = vsel %vm661_vm9, %v1210_v35, 0.0  ;;  %v981_v53 = vsel %vm661_vm9, 1.0, %v1087_v36 }
 0x681   : > { %v667_v30 = vsel %vm553_vm4, %v663_v29, 0.0 }
 0x682   : > { %668 = vadd.xlane.f32.xlu1 %v667_v30  ;;  %v579_v33 = vpop.xlane.xlu1 %578  ;;  %v606_v34 = vpop.xlane.xlu0 %605 }
 0x683   : > { %v610_v40 = vmul.f32 0.17677669, %v606_v34  ;;  %v581_v49 = vmul.f32 0.17677669, %v579_v33 }
 0x685   : > { %v672_v44 = vmax.f32 %v580_v42, %v610_v40 }
 0x686   : > { %v609_v37 = vpop.xlane.xlu1 %608  ;;  %v636_v39 = vpop.xlane.xlu0 %635 }
 0x687   : > { %v640_v43 = vmul.f32 0.17677669, %v636_v39  ;;  %v611_v45 = vmul.f32 0.17677669, %v609_v37  ;;  %v974_v39 = vsel %vm570_vm7, 1.0, %v1087_v36 }
 0x689   : > { %v674_v47 = vmax.f32 %v672_v44, %v640_v43  ;;  %v673_v54 = vmax.f32 %v581_v49, %v611_v45 }
 0x68a   : > { %v639_v35 = vpop.xlane.xlu1 %638 }
 0x68b   : > { %v641_v51 = vmul.f32 0.17677669, %v639_v35  ;;  %v978_v35 = vsel %vm630_vm15, 1.0, %v1087_v36 }
 0x68d   : > { %v675_v62 = vmax.f32 %v673_v54, %v641_v51 }
 0x707   : > { %v666_v46 = vpop.xlane.xlu0 %665 }
 0x708   : > { %v670_v48 = vmul.f32 0.17677669, %v666_v46 }
 0x70a   : > { %v676_v52 = vmax.f32 %v674_v47, %v670_v48 }
 0x70b   : > { %v669_v55 = vpop.xlane.xlu1 %668 }
 0x70c   : > { %v678_v56 = vsub.f32 %v580_v42, %v676_v52  ;;  %v684_v57 = vsub.f32 %v610_v40, %v676_v52  ;;  %v690_v60 = vsub.f32 %v640_v43, %v676_v52  ;;  %v696_v61 = vsub.f32 %v670_v48, %v676_v52 }
 0x70d   : > { %v671_v63 = vmul.f32 0.17677669, %v669_v55  ;;  %v976_v40 = vsel %vm600_vm11, 1.0, %v1087_v36 }
 0x70e   : > { %v680_v1 = vmul.f32 1.442695, %v678_v56  ;;  %v686_v2 = vmul.f32 1.442695, %v684_v57  ;;  %v692_v4 = vmul.f32 1.442695, %v690_v60 }
 0x70f   : > { %v677_v5 = vmax.f32 %v675_v62, %v671_v63  ;;  %v698_v6 = vmul.f32 1.442695, %v696_v61  ;;  %v979_v57 = vsel %vm631_vm1, 1.0, %v1087_v36 }
 0x710   : > { %1059 = vpow2.f32 %v680_v1 }
 0x711   : > { %1061 = vpow2.f32 %v686_v2  ;;  %v679_v7 = vsub.f32 %v581_v49, %v677_v5  ;;  %v685_v8 = vsub.f32 %v611_v45, %v677_v5  ;;  %v691_v9 = vsub.f32 %v641_v51, %v677_v5 }
 0x712   : > { %v697_v10 = vsub.f32 %v671_v63, %v677_v5  ;;  %1063 = vpow2.f32 %v692_v4  ;;  %v975_v51 = vsel %vm571_vm8, 1.0, %v1087_v36  ;;  %v1054_v4 = vld [vmem:[%s1381_s4] sm:$0xff]  }
 0x713   : > { %v682_v11 = vmul.f32 1.442695, %v679_v7  ;;  %v688_v12 = vmul.f32 1.442695, %v685_v8  ;;  %1065 = vpow2.f32 %v698_v6  ;;  %v694_v13 = vmul.f32 1.442695, %v691_v9  ;;  %1037 = vmatpush3.bf16.msra.mxu0 %v1054_v4 }
 0x714   : > { %v700_v14 = vmul.f32 1.442695, %v697_v10 }
 0x715   : > { %1067 = vpow2.f32 %v682_v11 }
 0x716   : > { %1069 = vpow2.f32 %v688_v12 }
 0x717   : > { %1071 = vpow2.f32 %v694_v13 }
 0x718   : > { %1073 = vpow2.f32 %v700_v14 }
 0x71d   : > { %v1060_v15 = vpop.eup %1059 }
 0x71e   : > { %v1062_v16 = vpop.eup %1061 }
 0x71f   : > { %v702_v17 = vadd.f32 %v1062_v16, %v1060_v15  ;;  %v1064_v18 = vpop.eup %1063 }
 0x720   : > { %v1066_v19 = vpop.eup %1065 }
 0x721   : > { %v704_v20 = vadd.f32 %v1064_v18, %v702_v17 }
 0x722   : > { %v1068_v21 = vpop.eup %1067 }
 0x723   : > { %v1070_v22 = vpop.eup %1069  ;;  %v706_v23 = vadd.f32 %v1066_v19, %v704_v20 }
 0x724   : > { %v703_v25 = vadd.f32 %v1070_v22, %v1068_v21  ;;  %v1072_v27 = vpop.eup %1071 }
 0x725   : > { %1075 = vrcp.f32 %v706_v23  ;;  %v1074_v30 = vpop.eup %1073 }
 0x726   : > { %v705_v29 = vadd.f32 %v1072_v27, %v703_v25 }
 0x728   : > { %v707_v31 = vadd.f32 %v1074_v30, %v705_v29 }
 0x72a   : > { %1077 = vrcp.f32 %v707_v31 }
 0x732   : > { %v1076_v32 = vpop.eup %1075 }
 0x733   : > { %v710_v33 = vmul.f32 %v1076_v32, %v1060_v15  ;;  %v718_v34 = vmul.f32 %v1076_v32, %v1062_v16  ;;  %v728_v37 = vmul.f32 %v1076_v32, %v1064_v18  ;;  %v738_v42 = vmul.f32 %v1076_v32, %v1066_v19 }
 0x735   : > { %v716_v43 = vmul.f32 %v974_v39, %v710_v33  ;;  %v724_v44 = vmul.f32 %v976_v40, %v718_v34  ;;  %v734_v47 = vmul.f32 %v978_v35, %v728_v37  ;;  %v744_v54 = vmul.f32 %v980_v38, %v738_v42 }
 0x737   : > { %v1078_v45 = vpop.eup %1077  ;;  %v726_v46 = vadd.f32 %v724_v44, %v716_v43 }
 0x738   : > { %v711_v48 = vmul.f32 %v1078_v45, %v1068_v21  ;;  %v719_v49 = vmul.f32 %v1078_v45, %v1070_v22  ;;  %v729_v50 = vmul.f32 %v1078_v45, %v1072_v27  ;;  %v739_v55 = vmul.f32 %v1078_v45, %v1074_v30 }
 0x739   : > { %v736_v52 = vadd.f32 %v734_v47, %v726_v46 }
 0x73a   : > { %v717_v56 = vmul.f32 %v975_v51, %v711_v48  ;;  %v725_v24 = vmul.f32 %v977_v0, %v719_v49  ;;  %v735_v41 = vmul.f32 %v979_v57, %v729_v50  ;;  %v745_v63 = vmul.f32 %v981_v53, %v739_v55 }
 0x73b   : > { %v746_v60 = vadd.f32 %v744_v54, %v736_v52 }
 0x73c   : > { %v727_v61 = vadd.f32 %v725_v24, %v717_v56 }
 0x73e   : > { %v737_v62 = vadd.f32 %v735_v41, %v727_v61 }
 0x740   : > { %v747_v1 = vadd.f32 %v745_v63, %v737_v62 }
 0x742   : > { %v748_v2 = vpack.c.bf16 %v747_v1, %v746_v60 }
 0x744   : > { %1031 = vmatmul.mubr.msk.bf16.vlgmr.msra.gmra.mxu1 %vm553_vm4, %v748_v2 }
 0x804   : > { %v786_v36 = vpop.f32.mrf.mxu1 }
 0x806   : > { %v1032_v26 = vpop.f32.mrf.mxu1 }
 0x808   : > { %v789_v3 = vpop.f32.mrf.mxu1 }
 0x809   : > { %v793_v28 = vpack.c.bf16 %v789_v3, %v786_v36 }
 0x80a   : > { %v1033_v5 = vpop.f32.mrf.mxu1 }
 0x80b   : > { %1039 = vmatmul.mubr.msk.bf16.vlgmr.msra.gmra.mxu0 %vm502_vm3, %v793_v28 }
 0x8cb   : > { %v847_v6 = vpop.f32.mrf.mxu0 }
 0x8cc   : > { %854 = vst.msk [vmem:[%s279_s22] sm:$0xff] %vm294_vm0, %v847_v6 }
 0x8cd   : > { %v1040_v7 = vpop.f32.mrf.mxu0 }
 0x8cf   : > { %v850_v8 = vpop.f32.mrf.mxu0 }
 0x8d0   : > { %855 = vst.msk [vmem:[%s279_s22 + $0x8] sm:$0xff] %vm294_vm0, %v850_v8 }
 0x8d1   : > { %v1041_v58 = vpop.f32.mrf.mxu0 }
 0x8d2 PF: > { %s17_s21 = sadd.s32 1, %s1085_s21  }
 0x8d3   : > { %p14_p4 = scmp.ge.s32.totalorder %s17_s21, 4  }
 0x8d5   :  { %16 = sbr.rel (!%p14_p4) target bundleno = 1 (0x1), region = 85 }

</bundles_post_ra>
